<compile_context>
chip_gen: v7x
topology: tpu7x:2x2x1
jax: 0.10.0
libtpu: 0.0.40
codegen_flags: <defaults>
</compile_context>

<pallas_src>
import math
from functools import partial

import jax
import jax.numpy as jnp
from jax import lax
from jax.experimental import pallas as pl
from jax.experimental.pallas import tpu as pltpu


# ----------------------------------------------------------------------------
# One TransformerConv block (+ReLU), row-tiled over destination nodes.
# ----------------------------------------------------------------------------
def transformer_block_kernel(x_full_ref, x_tile_ref, cnt_ref,
                             wqs_ref, bqs_ref, wkv_ref, bkv_ref,
                             o_ref, *, heads, out_ch):
    C = out_ch
    # K/V projection over ALL source nodes; Q/skip only for this row tile.
    # bf16 operands, f32 accumulation.
    kv = jnp.dot(x_full_ref[...], wkv_ref[...],
                 preferred_element_type=jnp.float32) + bkv_ref[...]      # (N, 2*H*C)
    qs = jnp.dot(x_tile_ref[...], wqs_ref[...],
                 preferred_element_type=jnp.float32) + bqs_ref[...]      # (TM, 2*H*C)

    # bf16 edge-multiplicity tile; NO persistent f32 copy, NO additive mask.
    cnt = cnt_ref[...]                                                   # (TM, N) bf16

    head_outs = []
    for hh in range(heads):                                              # small, static
        c0 = 2 * C * hh                                                  # per-head contiguous
        qh = qs[:, c0:c0 + C]            # 1/sqrt(C) already folded into W_q
        sk = qs[:, c0 + C:c0 + 2 * C]
        kh = kv[:, c0:c0 + C]
        vh = kv[:, c0 + C:c0 + 2 * C]

        # NT matmul (contract last dims) -> no explicit transpose of kh.
        s = lax.dot_general(qh.astype(jnp.bfloat16), kh.astype(jnp.bfloat16),
                            (((1,), (1,)), ((), ())),
                            preferred_element_type=jnp.float32)          # (TM, N)

        # Softmax over incoming edges.  Row max is over a superset of the
        # edge logits (never overflows exp); non-edges vanish because cnt==0
        # multiplies them out of numerator and denominator; zero-in-degree
        # rows rely on the denom clamp -> alpha = 0 -> output = ReLU(skip).
        m = jnp.max(s, axis=-1, keepdims=True)
        e = cnt * jnp.exp(s - m)                 # bf16 * f32 -> f32, dup-edge weighted
        denom = jnp.sum(e, axis=-1, keepdims=True)
        alpha = e * pl.reciprocal(jnp.maximum(denom, 1e-16), approx=True)

        attn = jnp.dot(alpha.astype(jnp.bfloat16), vh.astype(jnp.bfloat16),
                       preferred_element_type=jnp.float32)
        head_outs.append(attn + sk)

    # ReLU; dropout is identity in eval mode.
    # TODO(synk): training-mode dropout (RNG) omitted; eval mode = identity.
    h = jnp.maximum(jnp.concatenate(head_outs, axis=-1), 0.0)
    o_ref[...] = h.astype(o_ref.dtype)


def transformer_block(h, cnt, params, heads, out_ch, tm):
    n_pad, in_dim = h.shape
    d_out = heads * out_ch
    w_qs, b_qs, w_kv, b_kv = params
    full = lambda a: pl.BlockSpec(a.shape, lambda i: (0,) * a.ndim)
    return pl.pallas_call(
        partial(transformer_block_kernel, heads=heads, out_ch=out_ch),
        out_shape=jax.ShapeDtypeStruct((n_pad, d_out), jnp.bfloat16),
        grid=(n_pad // tm,),
        in_specs=[
            full(h),                                          # x_full: all source nodes (K/V)
            pl.BlockSpec((tm, in_dim), lambda i: (i, 0)),     # x_tile: destination rows (Q/skip)
            pl.BlockSpec((tm, n_pad), lambda i: (i, 0)),      # cnt row tile (bf16)
            full(w_qs), full(b_qs), full(w_kv), full(b_kv),
        ],
        out_specs=pl.BlockSpec((tm, d_out), lambda i: (i, 0)),
        compiler_params=pltpu.CompilerParams(
            dimension_semantics=("parallel",),                # megacore-shard row tiles
            vmem_limit_bytes=32 * 1024 * 1024),               # explicit (v5e default is 16 MiB)
    )(h, h, cnt, w_qs, b_qs, w_kv, b_kv)
    # TODO(synk): at scaled N, choose TM per generation (v7x has 64 MiB VMEM /
    # 32 MiB scoped default): per-tile live set ~ TM*N bf16 cnt (x2 buffers)
    # + TM*N f32 score/alpha per head + projections.


# ----------------------------------------------------------------------------
# Global mean pool (inv-counts folded into pmat) + final Linear.
# ----------------------------------------------------------------------------
def pool_fc_kernel(h_ref, pmat_ref, wfc_row_ref, bfc_ref, o_ref):
    pooled = jnp.dot(pmat_ref[...], h_ref[...],
                     preferred_element_type=jnp.float32)                 # (G, D)
    # output_dim == 1: VPU lane-reduction instead of a 1-column MXU matmul.
    # TODO(synk): for output_dim > 1, use a matmul with a 128-lane-padded
    # output slab and slice on the host instead.
    o_ref[...] = jnp.sum(pooled * wfc_row_ref[...], axis=-1,
                         keepdims=True) + bfc_ref[...]


def pool_fc(h, pmat_scaled, wfc_row, bfc):
    n_graphs = pmat_scaled.shape[0]
    out_dim = bfc.shape[1]
    full = lambda a: pl.BlockSpec(a.shape, lambda: (0,) * a.ndim)
    args = [h, pmat_scaled, wfc_row, bfc]
    return pl.pallas_call(
        pool_fc_kernel,
        out_shape=jax.ShapeDtypeStruct((n_graphs, out_dim), jnp.float32),
        in_specs=[full(a) for a in args],
        out_specs=pl.BlockSpec((n_graphs, out_dim), lambda: (0, 0)),
    )(*args)


# ----------------------------------------------------------------------------
# Parameter init (deterministic, Glorot-like, matching PyG defaults)
# ----------------------------------------------------------------------------
def glorot(key, shape):
    fan_in, fan_out = shape
    limit = math.sqrt(6.0 / (fan_in + fan_out))
    return jax.random.uniform(key, shape, jnp.float32, -limit, limit)


def init_block_params(key, in_dim, heads, out_ch):
    C = out_ch
    kq, kk, kv, ks = jax.random.split(key, 4)
    wq = glorot(kq, (in_dim, heads * C)) * (1.0 / math.sqrt(C))   # fold attention scale
    wk = glorot(kk, (in_dim, heads * C))
    wv = glorot(kv, (in_dim, heads * C))
    ws = glorot(ks, (in_dim, heads * C))

    def per_head_concat(wa, wb):          # [a_h | b_h] contiguous per head
        cols = []
        for h in range(heads):
            cols.append(wa[:, h * C:(h + 1) * C])
            cols.append(wb[:, h * C:(h + 1) * C])
        return jnp.concatenate(cols, axis=1)

    w_qs = per_head_concat(wq, ws).astype(jnp.bfloat16)           # (in, 2*H*C)
    w_kv = per_head_concat(wk, wv).astype(jnp.bfloat16)           # (in, 2*H*C)
    b_qs = jnp.zeros((1, 2 * heads * C), jnp.float32)
    b_kv = jnp.zeros((1, 2 * heads * C), jnp.float32)
    return w_qs, b_qs, w_kv, b_kv


if __name__ == "__main__":
    key = jax.random.PRNGKey(0)

    # Model config: input_dim=8, hidden_dims=[16,16], heads=2, output_dim=1, pooling='mean'
    input_dim = 8
    hidden_dims = [16, 16]
    heads = [2, 2]
    output_dim = 1

    # Graph: 12 nodes, 2 graphs (6 nodes each), 24 directed edges kept within graphs.
    n_nodes, n_graphs = 12, 2
    TM = 8
    n_pad = ((n_nodes + TM - 1) // TM) * TM    # 16: bf16-sublane multiple; padded nodes are no-ops
    # NOTE: at these shapes the MXU is mostly idle; the real scaling lever is
    # batching more graphs/nodes per call (aim for >=256 contraction dims).

    k_x, k_s0, k_d0, k_s1, k_d1, k_p1, k_p2, k_fc = jax.random.split(key, 8)

    x = jax.random.normal(k_x, (n_nodes, input_dim), jnp.float32)
    src = jnp.concatenate([jax.random.randint(k_s0, (12,), 0, 6),
                           jax.random.randint(k_s1, (12,), 6, 12)])
    dst = jnp.concatenate([jax.random.randint(k_d0, (12,), 0, 6),
                           jax.random.randint(k_d1, (12,), 6, 12)])
    batch = jnp.array([0] * 6 + [1] * 6, jnp.int32)

    # Dense edge-multiplicity matrix cnt[dst, src] += 1 (duplicate edges counted,
    # matching PyG TransformerConv softmax semantics); bf16 is exact for small counts.
    cnt = jnp.zeros((n_pad, n_pad), jnp.float32).at[dst, src].add(1.0).astype(jnp.bfloat16)

    # Padded node features (padded rows zero, no edges, zero pooling weight).
    x_pad = jnp.zeros((n_pad, input_dim), jnp.float32).at[:n_nodes].set(x).astype(jnp.bfloat16)

    # Mean-pooling matrix with inverse counts folded in, padded on the node axis.
    pmat = (batch[None, :] == jnp.arange(n_graphs)[:, None]).astype(jnp.float32)
    inv_counts = 1.0 / jnp.maximum(pmat.sum(axis=1, keepdims=True), 1.0)
    pmat_scaled = (jnp.zeros((n_graphs, n_pad), jnp.float32)
                   .at[:, :n_nodes].set(pmat * inv_counts).astype(jnp.bfloat16))

    # Block parameters (per-head-contiguous fused weights, attention scale folded into W_q).
    dims_in = [input_dim, hidden_dims[0] * heads[0]]
    params = [init_block_params(k_p1, dims_in[0], heads[0], hidden_dims[0]),
              init_block_params(k_p2, dims_in[1], heads[1], hidden_dims[1])]

    # Final fc: xavier_uniform_ weight, zero bias; passed as a (1, D) row for the
    # in-kernel VPU reduction (output_dim == 1).
    wfc = glorot(k_fc, (hidden_dims[-1] * heads[-1], output_dim))
    wfc_row = wfc.T                                   # (1, D), f32
    bfc = jnp.zeros((1, output_dim), jnp.float32)

    h = x_pad
    for (hd, hc), p in zip(zip(heads, hidden_dims), params):
        h = transformer_block(h, cnt, p, hd, hc, TM)
    out = pool_fc(h, pmat_scaled, wfc_row, bfc)

    out = jax.block_until_ready(out)
    assert out.shape == (n_graphs, output_dim)
    assert bool(jnp.all(jnp.isfinite(out)))
    print("KERNEL_OK")
</pallas_src>

<mosaic_0001>
module attributes {stable_mosaic.version = 11 : i64} {
  func.func @transformer_block_kernel(%arg0: i32, %arg1: memref<16x8xbf16, #tpu.memory_space<vmem>>, %arg2: memref<8x8xbf16, #tpu.memory_space<vmem>>, %arg3: memref<8x16xbf16, #tpu.memory_space<vmem>>, %arg4: memref<8x64xbf16, #tpu.memory_space<vmem>>, %arg5: memref<1x64xf32, #tpu.memory_space<vmem>>, %arg6: memref<8x64xbf16, #tpu.memory_space<vmem>>, %arg7: memref<1x64xf32, #tpu.memory_space<vmem>>, %arg8: memref<8x32xbf16, #tpu.memory_space<vmem>>) attributes {dimension_semantics = [#tpu.dimension_semantics<parallel>], iteration_bounds = array<i64: 2>, scalar_prefetch = 0 : i64, scratch_operands = 0 : i64, tpu.core_type = #tpu.core_type<tc>, window_params = [{pipeline_mode = #tpu.pipeline_mode<synchronous>, transform_indices = @transform_0, window_bounds = array<i64: 16, 8>}, {transform_indices = @transform_1, window_bounds = array<i64: 8, 8>}, {transform_indices = @transform_2, window_bounds = array<i64: 8, 16>}, {pipeline_mode = #tpu.pipeline_mode<synchronous>, transform_indices = @transform_3, window_bounds = array<i64: 8, 64>}, {pipeline_mode = #tpu.pipeline_mode<synchronous>, transform_indices = @transform_4, window_bounds = array<i64: 1, 64>}, {pipeline_mode = #tpu.pipeline_mode<synchronous>, transform_indices = @transform_5, window_bounds = array<i64: 8, 64>}, {pipeline_mode = #tpu.pipeline_mode<synchronous>, transform_indices = @transform_6, window_bounds = array<i64: 1, 64>}, {transform_indices = @transform_7, window_bounds = array<i64: 8, 32>}]} {
    %c0 = arith.constant 0 : index
    %c0_0 = arith.constant 0 : index
    %0 = vector.load %arg1[%c0, %c0_0] : memref<16x8xbf16, #tpu.memory_space<vmem>>, vector<16x8xbf16>
    %c0_1 = arith.constant 0 : index
    %c0_2 = arith.constant 0 : index
    %1 = vector.load %arg6[%c0_1, %c0_2] : memref<8x64xbf16, #tpu.memory_space<vmem>>, vector<8x64xbf16>
    %cst = arith.constant dense<0.000000e+00> : vector<16x64xf32>
    %2 = tpu.matmul %0, %1, %cst {dimension_numbers = #tpu.dot_dimension_numbers<[1], [0], [0], [1], [0, 0, 1, 1], [], []>} : vector<16x8xbf16>, vector<8x64xbf16>, vector<16x64xf32> -> vector<16x64xf32>
    %c0_3 = arith.constant 0 : index
    %c0_4 = arith.constant 0 : index
    %3 = vector.load %arg7[%c0_3, %c0_4] : memref<1x64xf32, #tpu.memory_space<vmem>>, vector<1x64xf32>
    %4 = vector.broadcast %3 : vector<1x64xf32> to vector<16x64xf32>
    %5 = arith.addf %2, %4 : vector<16x64xf32>
    %c0_5 = arith.constant 0 : index
    %c0_6 = arith.constant 0 : index
    %6 = vector.load %arg2[%c0_5, %c0_6] : memref<8x8xbf16, #tpu.memory_space<vmem>>, vector<8x8xbf16>
    %c0_7 = arith.constant 0 : index
    %c0_8 = arith.constant 0 : index
    %7 = vector.load %arg4[%c0_7, %c0_8] : memref<8x64xbf16, #tpu.memory_space<vmem>>, vector<8x64xbf16>
    %cst_9 = arith.constant dense<0.000000e+00> : vector<8x64xf32>
    %8 = tpu.matmul %6, %7, %cst_9 {dimension_numbers = #tpu.dot_dimension_numbers<[1], [0], [0], [1], [0, 0, 1, 1], [], []>} : vector<8x8xbf16>, vector<8x64xbf16>, vector<8x64xf32> -> vector<8x64xf32>
    %c0_10 = arith.constant 0 : index
    %c0_11 = arith.constant 0 : index
    %9 = vector.load %arg5[%c0_10, %c0_11] : memref<1x64xf32, #tpu.memory_space<vmem>>, vector<1x64xf32>
    %10 = vector.broadcast %9 : vector<1x64xf32> to vector<8x64xf32>
    %11 = arith.addf %8, %10 : vector<8x64xf32>
    %c0_12 = arith.constant 0 : index
    %c0_13 = arith.constant 0 : index
    %12 = vector.load %arg3[%c0_12, %c0_13] : memref<8x16xbf16, #tpu.memory_space<vmem>>, vector<8x16xbf16>
    %13 = vector.extract_strided_slice %11 {offsets = [0, 0], sizes = [8, 16], strides = [1, 1]} : vector<8x64xf32> to vector<8x16xf32>
    %14 = vector.extract_strided_slice %11 {offsets = [0, 16], sizes = [8, 16], strides = [1, 1]} : vector<8x64xf32> to vector<8x16xf32>
    %15 = vector.extract_strided_slice %5 {offsets = [0, 0], sizes = [16, 16], strides = [1, 1]} : vector<16x64xf32> to vector<16x16xf32>
    %16 = vector.extract_strided_slice %5 {offsets = [0, 16], sizes = [16, 16], strides = [1, 1]} : vector<16x64xf32> to vector<16x16xf32>
    %17 = arith.truncf %13 : vector<8x16xf32> to vector<8x16xbf16>
    %18 = arith.truncf %15 : vector<16x16xf32> to vector<16x16xbf16>
    %cst_14 = arith.constant dense<0.000000e+00> : vector<8x16xf32>
    %19 = tpu.matmul %17, %18, %cst_14 {dimension_numbers = #tpu.dot_dimension_numbers<[1], [1], [0], [0], [0, 0, 1, 0], [], []>} : vector<8x16xbf16>, vector<16x16xbf16>, vector<8x16xf32> -> vector<8x16xf32>
    %cst_15 = arith.constant dense<0xFF800000> : vector<8xf32>
    %20 = vector.multi_reduction <maximumf>, %19, %cst_15 [1] : vector<8x16xf32> to vector<8xf32>
    %21 = vector.shape_cast %20 : vector<8xf32> to vector<8x1xf32>
    %22 = vector.broadcast %21 : vector<8x1xf32> to vector<8x16xf32>
    %23 = arith.subf %19, %22 : vector<8x16xf32>
    %24 = math.exp %23 : vector<8x16xf32>
    %25 = arith.extf %12 : vector<8x16xbf16> to vector<8x16xf32>
    %26 = arith.mulf %25, %24 : vector<8x16xf32>
    %cst_16 = arith.constant dense<0.000000e+00> : vector<8xf32>
    %27 = vector.multi_reduction <add>, %26, %cst_16 [1] : vector<8x16xf32> to vector<8xf32>
    %28 = vector.shape_cast %27 : vector<8xf32> to vector<8x1xf32>
    %cst_17 = arith.constant 1.000000e-16 : f32
    %29 = vector.broadcast %cst_17 : f32 to vector<8x1xf32>
    %30 = arith.maximumf %28, %29 : vector<8x1xf32>
    %31 = tpu.reciprocal %30 {approx = true} : vector<8x1xf32> -> vector<8x1xf32>
    %32 = vector.broadcast %31 : vector<8x1xf32> to vector<8x16xf32>
    %33 = arith.mulf %26, %32 : vector<8x16xf32>
    %34 = arith.truncf %33 : vector<8x16xf32> to vector<8x16xbf16>
    %35 = arith.truncf %16 : vector<16x16xf32> to vector<16x16xbf16>
    %cst_18 = arith.constant dense<0.000000e+00> : vector<8x16xf32>
    %36 = tpu.matmul %34, %35, %cst_18 {dimension_numbers = #tpu.dot_dimension_numbers<[1], [0], [0], [1], [0, 0, 1, 1], [], []>} : vector<8x16xbf16>, vector<16x16xbf16>, vector<8x16xf32> -> vector<8x16xf32>
    %37 = arith.addf %36, %14 : vector<8x16xf32>
    %38 = vector.extract_strided_slice %11 {offsets = [0, 32], sizes = [8, 16], strides = [1, 1]} : vector<8x64xf32> to vector<8x16xf32>
    %39 = vector.extract_strided_slice %11 {offsets = [0, 48], sizes = [8, 16], strides = [1, 1]} : vector<8x64xf32> to vector<8x16xf32>
    %40 = vector.extract_strided_slice %5 {offsets = [0, 32], sizes = [16, 16], strides = [1, 1]} : vector<16x64xf32> to vector<16x16xf32>
    %41 = vector.extract_strided_slice %5 {offsets = [0, 48], sizes = [16, 16], strides = [1, 1]} : vector<16x64xf32> to vector<16x16xf32>
    %42 = arith.truncf %38 : vector<8x16xf32> to vector<8x16xbf16>
    %43 = arith.truncf %40 : vector<16x16xf32> to vector<16x16xbf16>
    %cst_19 = arith.constant dense<0.000000e+00> : vector<8x16xf32>
    %44 = tpu.matmul %42, %43, %cst_19 {dimension_numbers = #tpu.dot_dimension_numbers<[1], [1], [0], [0], [0, 0, 1, 0], [], []>} : vector<8x16xbf16>, vector<16x16xbf16>, vector<8x16xf32> -> vector<8x16xf32>
    %cst_20 = arith.constant dense<0xFF800000> : vector<8xf32>
    %45 = vector.multi_reduction <maximumf>, %44, %cst_20 [1] : vector<8x16xf32> to vector<8xf32>
    %46 = vector.shape_cast %45 : vector<8xf32> to vector<8x1xf32>
    %47 = vector.broadcast %46 : vector<8x1xf32> to vector<8x16xf32>
    %48 = arith.subf %44, %47 : vector<8x16xf32>
    %49 = math.exp %48 : vector<8x16xf32>
    %50 = arith.extf %12 : vector<8x16xbf16> to vector<8x16xf32>
    %51 = arith.mulf %50, %49 : vector<8x16xf32>
    %cst_21 = arith.constant dense<0.000000e+00> : vector<8xf32>
    %52 = vector.multi_reduction <add>, %51, %cst_21 [1] : vector<8x16xf32> to vector<8xf32>
    %53 = vector.shape_cast %52 : vector<8xf32> to vector<8x1xf32>
    %cst_22 = arith.constant 1.000000e-16 : f32
    %54 = vector.broadcast %cst_22 : f32 to vector<8x1xf32>
    %55 = arith.maximumf %53, %54 : vector<8x1xf32>
    %56 = tpu.reciprocal %55 {approx = true} : vector<8x1xf32> -> vector<8x1xf32>
    %57 = vector.broadcast %56 : vector<8x1xf32> to vector<8x16xf32>
    %58 = arith.mulf %51, %57 : vector<8x16xf32>
    %59 = arith.truncf %58 : vector<8x16xf32> to vector<8x16xbf16>
    %60 = arith.truncf %41 : vector<16x16xf32> to vector<16x16xbf16>
    %cst_23 = arith.constant dense<0.000000e+00> : vector<8x16xf32>
    %61 = tpu.matmul %59, %60, %cst_23 {dimension_numbers = #tpu.dot_dimension_numbers<[1], [0], [0], [1], [0, 0, 1, 1], [], []>} : vector<8x16xbf16>, vector<16x16xbf16>, vector<8x16xf32> -> vector<8x16xf32>
    %62 = arith.addf %61, %39 : vector<8x16xf32>
    %63 = tpu.concatenate %37, %62 in 1 : vector<8x16xf32>, vector<8x16xf32> -> vector<8x32xf32>
    %cst_24 = arith.constant 0.000000e+00 : f32
    %64 = vector.broadcast %cst_24 : f32 to vector<8x32xf32>
    %65 = arith.maximumf %63, %64 : vector<8x32xf32>
    %66 = arith.truncf %65 : vector<8x32xf32> to vector<8x32xbf16>
    %c0_25 = arith.constant 0 : index
    %c0_26 = arith.constant 0 : index
    %67 = vector.load %arg8[%c0_25, %c0_26] : memref<8x32xbf16, #tpu.memory_space<vmem>>, vector<8x32xbf16>
    tpu.vector_store %arg8[%c0_25, %c0_26], %66 {strides = array<i32>} : memref<8x32xbf16, #tpu.memory_space<vmem>>, vector<8x32xbf16>,
    return
  }
  func.func @transform_0(%arg0: i32) -> (i32, i32) {
    %c0_i32 = arith.constant 0 : i32
    %c0_i32_0 = arith.constant 0 : i32
    %c0_i32_1 = arith.constant 0 : i32
    return %c0_i32, %c0_i32_0 : i32, i32
  }
  func.func @transform_1(%arg0: i32) -> (i32, i32) {
    %c0_i32 = arith.constant 0 : i32
    %c0_i32_0 = arith.constant 0 : i32
    return %arg0, %c0_i32 : i32, i32
  }
  func.func @transform_2(%arg0: i32) -> (i32, i32) {
    %c0_i32 = arith.constant 0 : i32
    %c0_i32_0 = arith.constant 0 : i32
    return %arg0, %c0_i32 : i32, i32
  }
  func.func @transform_3(%arg0: i32) -> (i32, i32) {
    %c0_i32 = arith.constant 0 : i32
    %c0_i32_0 = arith.constant 0 : i32
    %c0_i32_1 = arith.constant 0 : i32
    return %c0_i32, %c0_i32_0 : i32, i32
  }
  func.func @transform_4(%arg0: i32) -> (i32, i32) {
    %c0_i32 = arith.constant 0 : i32
    %c0_i32_0 = arith.constant 0 : i32
    %c0_i32_1 = arith.constant 0 : i32
    return %c0_i32, %c0_i32_0 : i32, i32
  }
  func.func @transform_5(%arg0: i32) -> (i32, i32) {
    %c0_i32 = arith.constant 0 : i32
    %c0_i32_0 = arith.constant 0 : i32
    %c0_i32_1 = arith.constant 0 : i32
    return %c0_i32, %c0_i32_0 : i32, i32
  }
  func.func @transform_6(%arg0: i32) -> (i32, i32) {
    %c0_i32 = arith.constant 0 : i32
    %c0_i32_0 = arith.constant 0 : i32
    %c0_i32_1 = arith.constant 0 : i32
    return %c0_i32, %c0_i32_0 : i32, i32
  }
  func.func @transform_7(%arg0: i32) -> (i32, i32) {
    %c0_i32 = arith.constant 0 : i32
    %c0_i32_0 = arith.constant 0 : i32
    return %arg0, %c0_i32 : i32, i32
  }
}

</mosaic_0001>

<bundles_post_ra>
// kernel: tpu_custom_call.1
= control target key start
LH: loop header
LB: loop body
LE: loop exit
PB: predicated region body
PF: predicated region fallthrough
CT: control target
= control target key end

     0   :  { %12 = vsyncpa [#allocation3], 0  ;;  %s1122_s0 = inlined_call_operand.vmem [shape: bf16[16,8], index: 0, kind: input, shape index: {}]   ;;  %s1123_s1 = inlined_call_operand.vmem [shape: bf16[16,8], index: 1, kind: input, shape index: {}]   ;;  %s1124_s2 = inlined_call_operand.vmem [shape: bf16[16,16], index: 2, kind: input, shape index: {}]   ;;  %s1125_s3 = inlined_call_operand.vmem [shape: bf16[8,64], index: 3, kind: input, shape index: {}]   ;;  %s1126_s4 = inlined_call_operand.vmem [shape: f32[1,64], index: 4, kind: input, shape index: {}]   ;;  %s1127_s5 = inlined_call_operand.vmem [shape: bf16[8,64], index: 5, kind: input, shape index: {}]   ;;  %s1128_s6 = inlined_call_operand.vmem [shape: f32[1,64], index: 6, kind: input, shape index: {}]   ;;  %s1129_s7 = inlined_call_operand.hbm [shape: bf16[16,32], index: 7, kind: output, shape index: {}]  }
   0x1   :  { %14 = vsyncpa [#allocation3 + $0x1], 0  ;;  %s968_s24 = smov 0   ;;  %s970_s25 = smov 0  }
   0x2   :  { %s972_s26 = smov 0   ;;  %s974_s27 = smov 0  }
   0x3 LB: > { %s989_s28 = sadd.s32 4294967295, %s919_s27   ;;  %s735_s29 = sadd.s32 4294967294, %s919_s27   ;;  %s919_s27 = sphi %s974_s27, %s1135_s27   ;;  %s915_s26 = sphi %s972_s26, %s1134_s26   ;;  %s911_s25 = sphi %s970_s25, %s1133_s25   ;;  %s907_s24 = sphi %s968_s24, %s1132_s24  }
   0x4   : > { %s993_s30 = sadd.s32 1, %s919_s27   ;;  %s184_s8 = sadd.s32 1, %s915_s26 }
   0x5   : > { %s181_s9 = ssub.s32 %s919_s27, %s993_s30  ;;  %p194_p0 = scmp.ne.s32.totalorder %s915_s26, %s911_s25 }
   0x6   : > { %p182_p1 = scmp.eq.s32.totalorder %s181_s9, 0  ;;  %p195_p2 = scmp.eq.s32.totalorder %s989_s28, 1 }
   0x7   : > { %p200_p3 = scmp.ne.s32.totalorder %s911_s25, %s907_s24  ;;  %p201_p4 = scmp.eq.s32.totalorder %s735_s29, 1 }
   0x8   : > { %s1004_s10 = scalar_select %p182_p1, %s915_s26, %s184_s8  }
   0x9   : > { %p1006_p5 = por %p195_p2, %p194_p0  ;;  %p1010_p6 = por %p201_p4, %p200_p3 }
   0xa   : > { %p738_p7 = scmp.ge.s32.totalorder %s919_s27, 1  ;;  %p248_p8 = scmp.lt.s32.totalorder %s919_s27, 3 }
   0xc   : > { %p249_p9 = pnand %p738_p7, %p248_p8 }
   0xd   : > { %v294_v0 = vld [vmem:[%s1127_s5] sm:$0xf] (!%p249_p9)  ;;  %vm311_vm0 = vcmask (!%p249_p9), 1043456   ;;  %v921_v1 = vmov (!%p249_p9), 0.0   ;;  %vm922_vm1 = vmmov (!%p249_p9), 0   ;;  %vm307_vm2 = vcmask (!%p249_p9), 64512  }
   0xe   : > { %252 = sbr.rel (%p249_p9) target bundleno = 1239 (0x4d7), region = 48  ;;  %767 = vmatprep.subr.bf16.mxu0 (!%p249_p9), %v921_v1  ;;  %v313_v2 = vsel (!%p249_p9), %vm311_vm0, %v294_v0, 0  ;;  %769 = vmatprep.mubr.msk.bf16.mxu0 (!%p249_p9), %vm922_vm1, %v921_v1  ;;  %v848_v3 = vld [vmem:[%s1122_s0] sm:$0xff] (!%p249_p9)   ;;  %p283_p10 = scmp.lt.s32.totalorder (!%p249_p9), %s989_s28, 1  ;;  %vm414_vm3 = vcmask (!%p249_p9), 130048   ;;  %vm648_vm4 = vcmask (!%p249_p9), 257024  }
   0xf   : > { %768 = vmatpush3.bf16.msra.mxu0 (!%p249_p9), %v313_v2  ;;  %773 = vmatprep.subr.bf16.mxu1 (!%p249_p9), %v921_v1  ;;  %v357_v4 = vld [vmem:[%s1125_s3] sm:$0xf] (!%p249_p9)  ;;  %s923_s14 = smov (!%p249_p9), 96   ;;  %s924_s15 = smov (!%p249_p9), 112  }
  0x10   : > { %v369_v5 = vsel (!%p249_p9), %vm311_vm0, %v357_v4, 0  ;;  %775 = vmatprep.mubr.msk.bf16.mxu1 (!%p249_p9), %vm922_vm1, %v921_v1  ;;  %779 = vmatprep.subr.bf16.mxu0 (!%p249_p9), %v921_v1  ;;  %v742_v7 = vld [vmem:[%s1128_s6] ss:$0 sm:$0xff] (!%p249_p9)  ;;  %s280_s21 = sand.u32 (!%p249_p9), 1, %s911_s25  }
  0x11   : > { %774 = vmatpush3.bf16.msra.mxu1 (!%p249_p9), %v369_v5  ;;  %v745_v11 = vld [vmem:[%s1126_s4] ss:$0 sm:$0xff] (!%p249_p9)  ;;  %s739_s22 = sshll.u32 (!%p249_p9), %s280_s21, 2 }
  0x12   : > { %770 = vmatmul.mubr.msk.bf16.vlgmr.msra.gmra.mrb[0].mxu0 (!%p249_p9), %vm307_vm2, %v848_v3  ;;  %785 = vmatprep.subr.bf16.mxu1 (!%p249_p9), %v921_v1  ;;  %s282_s29 = scalar_lea.vmem (!%p249_p9), [#allocation2], %s739_s22 }
  0x13   : > { %781 = vmatprep.mubr.msk.bf16.mxu0 (!%p249_p9), %vm922_vm1, %v921_v1  ;;  %s664_s8 = sshll.u32 (!%p249_p9), %s282_s29, 4  ;;  %s1082_s8 = int_to_ptr.vmem [resolvable:$true] %s664_s8 }
  0x14   : > { %s857_s16 = scalar_lea.vmem (!%p249_p9), %s1082_s8, 64 }
  0x15   : > { %s1034_s19 = scalar_select %p283_p10, %s989_s28, 1 }
  0x16   : > { %p858_p11 = scmp.ne.s32.totalorder %s1082_s8, %s857_s16 }
  0x17   : > { %s740_s20 = sshll.u32 %s1034_s19, 2  ;;  %s925_s19 = smov 80  }
  0x18   : > { %s286_s23 = scalar_lea.vmem %s1123_s1, %s740_s20  ;;  %s290_s18 = scalar_lea.vmem %s1124_s2, %s740_s20 }
  0x19   : > { %v356_v6 = vld [vmem:[%s286_s23] sm:$0xf]  ;;  %s926_s20 = smov 16   ;;  %s752_s23 = sshll.u32 %s989_s28, 6 }
  0x1a   : > { %776 = vmatmul.mubr.msk.bf16.vlgmr.msra.gmra.mrb[0].mxu1 %vm307_vm2, %v356_v6  ;;  %v411_v39 = vld [vmem:[%s290_s18] sm:$0xf]  ;;  %p859_p12 = pnand %p858_p11, %p1006_p5  ;;  %s927_s28 = smov [#allocation2]  }
  0x1b   : > { %787 = vmatprep.mubr.msk.bf16.mxu1 %vm922_vm1, %v921_v1  ;;  %v467_v40 = vunpack.c.l.bf16 %v411_v39  ;;  %s861_s17 = sshll.u32 %s927_s28, 4  ;;  %s862_s17 = int_to_ptr.vmem [resolvable:$false] %s861_s17 }
  0x1c   : > { %p860_p13 = pneg %p859_p12  ;;  %s863_s18 = scalar_lea.vmem %s862_s17, 128 }
  0x1d   : > { %p864_p0 = scmp.lt.s32.totalorder %s1082_s8, %s862_s17  ;;  %p865_p1 = scmp.lt.s32.totalorder %s863_s18, %s857_s16 }
  0x1f   : > { %p866_p2 = por %p865_p1, %p864_p0 }
  0x21   : > { %p867_p3 = pnand %p866_p2, %p860_p13 }
  0xe5   : > { %v349_v8 = vpop.f32.mrb[0].mxu0 }
  0xe6   : > { %v771_v9 = vpop.f32.mrb[1].mxu0  ;;  %v350_v12 = vadd.f32 %v742_v7, %v349_v8 }
  0xe7   : > { %v352_v10 = vpop.f32.mrb[2].mxu0 }
  0xe8   : > { %v353_v13 = vadd.f32 %v742_v7, %v352_v10  ;;  %v772_v14 = vpop.f32.mrb[3].mxu0 }
  0xea   : > { %v413_v16 = vpack.c.bf16 %v353_v13, %v350_v12 }
  0xec   : > { %530 = vrot.lane.b32.xlu0 %v413_v16, %s923_s14  ;;  %v419_v20 = vsel %vm414_vm3, %v413_v16, 0 }
  0xed   : > { %v405_v15 = vpop.f32.mrb[0].mxu1  ;;  %780 = vmatpush3.bf16.xpose.msra.mxu0 %v419_v20 }
  0xee   : > { %v406_v17 = vadd.f32 %v745_v11, %v405_v15  ;;  %v777_v18 = vpop.f32.mrb[1].mxu1  ;;  %791 = vmatprep.subr.bf16.mxu0 %v921_v1 }
  0xef   : > { %v408_v19 = vpop.f32.mrb[2].mxu1 }
  0xf0   : > { %v778_v21 = vpop.f32.mrb[3].mxu1  ;;  %v412_v22 = vpack.c.bf16 %v406_v17, %v406_v17 }
  0xf2   : > { %528 = vrot.lane.b32.xlu0 %v412_v22, %s923_s14  ;;  %s1080_s14 = scalar_lea.hbm %s1129_s7, %s752_s23 }
  0xf4   : > { %782 = vmatmul.mubr.msk.bf16.vlgmr.msra.gmra.mrb[4].mxu0 %vm414_vm3, %v412_v22 }
  0xf5   : > { %793 = vmatprep.mubr.msk.bf16.mxu0 %vm922_vm1, %v921_v1 }
 0x15e   : > { %v531_v23 = vpop.permute.xlu0 %530 }
 0x15f   : > { %v536_v24 = vsel %vm414_vm3, %v531_v23, 0 }
 0x160   : > { %792 = vmatpush3.bf16.xpose.msra.mxu0 %v536_v24 }
 0x164   : > { %v529_v25 = vpop.permute.xlu0 %528 }
 0x167   : > { %794 = vmatmul.mubr.msk.bf16.vlgmr.msra.gmra.mrb[8].mxu0 %vm414_vm3, %v529_v25 }
 0x1c7   : > { %v455_v26 = vpop.f32.mrb[4].mxu0 }
 0x1c8   : > { %v783_v27 = vpop.f32.mrb[5].mxu0  ;;  %v461_v28 = vsel %vm414_vm3, %v455_v26, -inf }
 0x1c9   : > { %462 = vmax.xlane.f32.xlu1 %v461_v28  ;;  %v458_v29 = vpop.f32.mrb[6].mxu0 }
 0x1ca   : > { %v784_v30 = vpop.f32.mrb[7].mxu0 }
 0x23a   : > { %v572_v31 = vpop.f32.mrb[8].mxu0 }
 0x23b   : > { %v795_v32 = vpop.f32.mrb[9].mxu0  ;;  %v578_v33 = vsel %vm414_vm3, %v572_v31, -inf }
 0x23c   : > { %579 = vmax.xlane.f32.xlu1 %v578_v33  ;;  %v575_v34 = vpop.f32.mrb[10].mxu0 }
 0x23d   : > { %v796_v35 = vpop.f32.mrb[11].mxu0 }
 0x24d   : > { %477 = vrot.lane.b32.xlu1 %v413_v16, %s924_s15 }
 0x256   : > { %v463_v36 = vpop.xlane.xlu1 %462 }
 0x257   : > { %v464_v37 = vsub.f32 %v455_v26, %v463_v36 }
 0x259   : > { %v465_v38 = vmul.f32 1.442695, %v464_v37 }
 0x25b   : > { %849 = vpow2.f32 %v465_v38 }
 0x265   : > { %v850_v41 = vpop.eup %849 }
 0x266   : > { %v468_v42 = vmul.f32 %v850_v41, %v467_v40 }
 0x268   : > { %v469_v43 = vsel %vm414_vm3, %v468_v42, 0.0 }
 0x269   : > { %470 = vadd.xlane.f32.xlu0 %v469_v43 }
 0x2c9   : > { %v580_v44 = vpop.xlane.xlu1 %579 }
 0x2ca   : > { %v581_v45 = vsub.f32 %v572_v31, %v580_v44 }
 0x2cc   : > { %v582_v46 = vmul.f32 1.442695, %v581_v45 }
 0x2cd   : > { %v478_v47 = vpop.permute.xlu1 %477 }
 0x2ce   : > { %851 = vpow2.f32 %v582_v46  ;;  %786 = vmatpush3.bf16.msra.mxu1 %v478_v47 }
 0x2cf   : > { %797 = vmatprep.subr.bf16.mxu1 %v921_v1 }
 0x2d8   : > { %v852_v48 = vpop.eup %851 }
 0x2d9   : > { %v584_v49 = vmul.f32 %v852_v48, %v467_v40 }
 0x2db   : > { %v585_v50 = vsel %vm414_vm3, %v584_v49, 0.0 }
 0x2dc   : > { %586 = vadd.xlane.f32.xlu1 %v585_v50 }
 0x2ed   : > { %592 = vrot.lane.b32.xlu1 %v413_v16, %s925_s19 }
 0x2f1   : > { %595 = vrot.lane.b32.xlu1 %v406_v17, %s925_s19 }
 0x2f5   : > { %481 = vrot.lane.b32.xlu1 %v406_v17, %s924_s15  ;;  %s651_s15 = scalar_lea.sflag [#allocation3], %s280_s21 }
 0x2f6   : > { %v471_v51 = vpop.xlane.xlu0 %470 }
 0x2f7   : > { %v472_v52 = vmax.f32 %v471_v51, 1e-16 }
 0x2f9   : > { %853 = vrcp.f32 %v472_v52 }
 0x303   : > { %v854_v53 = vpop.eup %853 }
 0x304   : > { %v474_v54 = vmul.f32 %v854_v53, %v468_v42 }
 0x306   : > { %v475_v55 = vpack.c.bf16 %v474_v54, %v474_v54 }
 0x308   : > { %788 = vmatmul.mubr.msk.bf16.vlgmr.msra.gmra.mrb[4].mxu1 %vm414_vm3, %v475_v55 }
 0x309   : > { %799 = vmatprep.mubr.msk.bf16.mxu1 %vm922_vm1, %v921_v1 }
 0x369   : > { %v587_v56 = vpop.xlane.xlu1 %586 }
 0x36a   : > { %v588_v57 = vmax.f32 %v587_v56, 1e-16 }
 0x36c   : > { %855 = vrcp.f32 %v588_v57 }
 0x36d   : > { %v593_v58 = vpop.permute.xlu1 %592 }
 0x36e   : > { %798 = vmatpush3.bf16.msra.mxu1 %v593_v58 }
 0x371   : > { %v596_v3 = vpop.permute.xlu1 %595 }
 0x375   : > { %v482_v8 = vpop.permute.xlu1 %481 }
 0x376   : > { %v856_v59 = vpop.eup %855 }
 0x377   : > { %v590_v60 = vmul.f32 %v856_v59, %v584_v49 }
 0x379   : > { %v591_v61 = vpack.c.bf16 %v590_v60, %v590_v60 }
 0x37b   : > { %800 = vmatmul.mubr.msk.bf16.vlgmr.msra.gmra.mrb[8].mxu1 %vm414_vm3, %v591_v61 }
 0x3db   : > { %v521_v62 = vpop.f32.mrb[4].mxu1 }
 0x3dc   : > { %v789_v63 = vpop.f32.mrb[5].mxu1  ;;  %v522_v9 = vadd.f32 %v521_v62, %v482_v8 }
 0x3dd   : > { %v524_v0 = vpop.f32.mrb[6].mxu1 }
 0x3de   : > { %v790_v2 = vpop.f32.mrb[7].mxu1 }
 0x44e   : > { %v635_v4 = vpop.f32.mrb[8].mxu1 }
 0x44f   : > { %v636_v5 = vadd.f32 %v635_v4, %v596_v3  ;;  %v801_v1 = vpop.f32.mrb[9].mxu1 }
 0x450   : > { %v638_v6 = vpop.f32.mrb[10].mxu1 }
 0x451   : > { %642 = vrot.lane.b32.xlu0 %v636_v5, %s926_s20  ;;  %v802_v7 = vpop.f32.mrb[11].mxu1 }
 0x4c3   : > { %v643_v10 = vpop.permute.xlu0 %642 }
 0x4c4   : > { %v645_v11 = vsel %vm414_vm3, %v522_v9, %v643_v10 }
 0x4c5   : > { %v646_v12 = vmax.f32 %v645_v11, 0.0 }
 0x4c7   : > { %v647_v13 = vpack.c.bf16 %v646_v12, %v646_v12 }
 0x4c9   : > { %649 = vst.msk [vmem:[%s282_s29] sm:$0xf] %vm648_vm4, %v647_v13 }
 0x4ca   : > { %870 = shalt.err (!%p867_p3)
}
 0x4cb   : > { %s871_s19 = scalar_lea.hbm %s1080_s14, 64  ;;  %s875_s22 = scalar_lea.hbm %s1129_s7, 128 }
 0x4cc   : > { %p872_p4 = scmp.ne.s32.totalorder %s1080_s14, %s871_s19  ;;  %p876_p9 = scmp.lt.u32.totalorder %s1080_s14, %s1129_s7 }
 0x4cd   : > { %p877_p10 = scmp.lt.u32.totalorder %s875_s22, %s871_s19  ;;  %p879_p12 = scmp.lt.u32.totalorder %s871_s19, %s1080_s14 }
 0x4ce   : > { %p873_p7 = pnand %p872_p4, %p1006_p5 }
 0x4cf   : > { %p878_p11 = por %p877_p10, %p876_p9 }
 0x4d0   : > { %p874_p8 = pneg %p873_p7 }
 0x4d1   : > { %p880_p13 = por %p879_p12, %p878_p11 }
 0x4d3   : > { %p881_p0 = pnand %p880_p13, %p874_p8 }
 0x4d5   : > { %884 = shalt.err (!%p881_p0)
}
 0x4d6   : > { %803 = dma.vmem_to_hbm [thread:$0]  (%p1006_p5), %s1082_s8, 64, %s1080_s14, %s651_s15  }
 0x4d7 PF: > { %p809_p1 = scmp.ge.s32.totalorder %s919_s27, 2  ;;  %s676_s9 = sand.u32 1, %s907_s24  }
 0x4d8   : > { %s677_s13 = scalar_lea.sflag [#allocation3], %s676_s9 }
 0x4d9   : > { %p806_p2 = pnand %p809_p1, %p1010_p6 }
 0x4db   : > { %902 = dma.done.wait (!%p806_p2), %s677_s13, 64  }
 0x4dc   : > { %904 = vsyncadd (!%p806_p2), %s677_s13, 4294967232  ;;  %p17_p3 = scmp.ge.s32.totalorder %s993_s30, 4   ;;  %s1132_s24 = smov %s911_s25 }
 0x4dd   : > { %s1133_s25 = smov %s915_s26  ;;  %s1134_s26 = smov %s1004_s10 }
 0x4de   : > { %s1135_s27 = smov %s993_s30  ;;  %19 = sbr.rel (!%p17_p3) target bundleno = 3 (0x3), region = 86 }
 0x4e5   :  { %682 = vsyncpa [#allocation3], 1 }
 0x4e6   :  { %684 = vsyncpa [#allocation3 + $0x1], 1 }

</bundles_post_ra>
